<compile_context>
chip_gen: v5e
topology: v5e:2x2
jax: 0.10.0
libtpu: 0.0.40
codegen_flags: <defaults>
</compile_context>

<pallas_src>
import jax
import jax.numpy as jnp
from jax.experimental import pallas as pl
from jax.experimental.pallas import tpu as pltpu

LANE = 128
_VMEM_LIMIT = 32 * 1024 * 1024  # leaves headroom on v7x (64 MiB physical VMEM)


def _round_up(n, m):
    return ((n + m - 1) // m) * m


# ----------------------------------------------------------------------------
# Kernel: y_k = relu(x_k @ w1 + b1) @ w2 + b2 for the four node inputs.
# Node k's result is written to output lanes [k*out_pad, (k+1)*out_pad), i.e.
# the output slab is the row-major view of (TILE_B, 4, out_pad).
# ----------------------------------------------------------------------------
def _node_enc_kernel(spv_ref, sh_ref, lvl_ref, spr_ref,
                     w1_ref, b1_ref, w2_ref, b2_ref, o_ref):
    w1 = w1_ref[...]                      # (in_dim,  hid_pad)  bf16
    w2 = w2_ref[...]                      # (hid_pad, out_pad)  bf16
    b1 = b1_ref[...]                      # (1, hid_pad)        f32
    b2 = b2_ref[...]                      # (1, out_pad)        f32
    out_pad = w2_ref.shape[1]

    # Static 4-way unroll; node order along the output = [spv, sh, level, spr].
    for k, x_ref in enumerate((spv_ref, sh_ref, lvl_ref, spr_ref)):
        x = x_ref[...].astype(jnp.bfloat16)                      # (T, in_dim)
        h = jnp.dot(x, w1, preferred_element_type=jnp.float32) + b1
        h = jnp.maximum(h, 0.0).astype(jnp.bfloat16)             # (T, hid_pad)
        y = jnp.dot(h, w2, preferred_element_type=jnp.float32) + b2
        o_ref[:, k * out_pad:(k + 1) * out_pad] = y.astype(o_ref.dtype)


# ----------------------------------------------------------------------------
# Wrapper
# ----------------------------------------------------------------------------
def node_enc_forward(params, dev_sh, dev_spv, dev_spr, dev_level, *, tile_b=512):
    """Node_Enc.forward.  Returns nodef of shape (B, 4, out_dim)."""
    B, in_dim = dev_sh.shape
    hid_pad = params["w1"].shape[1]
    out_pad = params["w2"].shape[1]
    out_dim = params["out_dim"]

    # Batch tile: multiple of 8 sublanes, capped so double-buffered blocks plus
    # the f32 hidden intermediate stay far below the 32 MiB scoped VMEM budget
    # (re-derived for v7x's smaller VMEM).
    tile_b = min(tile_b, _round_up(B, 8))
    b_pad = _round_up(B, tile_b)

    def pad_b(a):
        return a if b_pad == B else jnp.pad(a, ((0, b_pad - B), (0, 0)))

    # Node order for the output axis: [spv, sh, level, spr].
    inputs = [pad_b(a) for a in (dev_spv, dev_sh, dev_level, dev_spr)]
    w1, b1, w2, b2 = params["w1"], params["b1"], params["w2"], params["b2"]
    out_shape = jax.ShapeDtypeStruct((b_pad, 4 * out_pad), jnp.float32)

    if b_pad <= tile_b:
        # Tiny case: single full-array block, no grid -> no loop bookkeeping.
        y = pl.pallas_call(
            _node_enc_kernel,
            out_shape=out_shape,
            compiler_params=pltpu.CompilerParams(
                vmem_limit_bytes=_VMEM_LIMIT),
        )(*inputs, w1, b1, w2, b2)
    else:
        x_spec = pl.BlockSpec((tile_b, in_dim), lambda i: (i, 0))
        # Constant index_map -> weight/bias DMA issued once, skipped on revisit.
        w_spec = lambda shape: pl.BlockSpec(shape, lambda i: (0, 0))
        y = pl.pallas_call(
            _node_enc_kernel,
            out_shape=out_shape,
            grid=(b_pad // tile_b,),
            in_specs=[x_spec, x_spec, x_spec, x_spec,
                      w_spec((in_dim, hid_pad)),
                      w_spec((1, hid_pad)),
                      w_spec((hid_pad, out_pad)),
                      w_spec((1, out_pad))],
            out_specs=pl.BlockSpec((tile_b, 4 * out_pad), lambda i: (i, 0)),
            compiler_params=pltpu.CompilerParams(
                dimension_semantics=("parallel",),   # v7x: 2 TCs split tiles
                vmem_limit_bytes=_VMEM_LIMIT),
        )(*inputs, w1, b1, w2, b2)

    # (b_pad, 4*out_pad) -> (b_pad, 4, out_pad) is a free row-major reshape;
    # only the batch/lane padding is sliced off here.
    return y.reshape(b_pad, 4, out_pad)[:B, :, :out_dim]


# ----------------------------------------------------------------------------
# Parameters.  Only MLP_sh is used in the torch forward; MLP_spv / MLP_spr /
# MLP_level are dead weight and intentionally not materialized.
# Hidden/output dims are zero-padded to lane-dense (multiple-of-128) widths:
# the padded hidden units and output lanes stay exactly zero through
# ReLU / the second matmul, so they are mathematically inert.
# ----------------------------------------------------------------------------
def init_params(key, in_dim, out_dim):
    hid = 2 * in_dim
    hid_pad = _round_up(hid, LANE)
    out_pad = _round_up(out_dim, LANE)
    k1, k2, k3, k4 = jax.random.split(key, 4)
    scale = 0.1
    w1 = scale * jax.random.normal(k1, (in_dim, hid), jnp.float32)
    b1 = scale * jax.random.normal(k2, (hid,), jnp.float32)
    w2 = scale * jax.random.normal(k3, (hid, out_dim), jnp.float32)
    b2 = scale * jax.random.normal(k4, (out_dim,), jnp.float32)

    w1p = jnp.zeros((in_dim, hid_pad), jnp.bfloat16).at[:, :hid].set(
        w1.astype(jnp.bfloat16))
    b1p = jnp.zeros((1, hid_pad), jnp.float32).at[:, :hid].set(b1)
    w2p = jnp.zeros((hid_pad, out_pad), jnp.bfloat16).at[:hid, :out_dim].set(
        w2.astype(jnp.bfloat16))
    b2p = jnp.zeros((1, out_pad), jnp.float32).at[:, :out_dim].set(b2)
    return {"w1": w1p, "b1": b1p, "w2": w2p, "b2": b2p,
            "in_dim": in_dim, "hid": hid, "out_dim": out_dim}


# ----------------------------------------------------------------------------
if __name__ == "__main__":
    key = jax.random.PRNGKey(0)
    ksh, kspv, kspr, klvl, kp, kbig = jax.random.split(key, 6)

    B, in_dim, out_dim = 2, 3, 16
    dev_sh = jax.random.normal(ksh, (B, in_dim), jnp.float32)
    dev_spv = jax.random.normal(kspv, (B, in_dim), jnp.float32)
    dev_spr = jax.random.normal(kspr, (B, in_dim), jnp.float32)
    dev_level = jax.random.normal(klvl, (B, in_dim), jnp.float32)

    params = init_params(kp, in_dim, out_dim)

    # Pure-JAX reference mirroring the kernel's bf16 weights / casts.
    w1f = params["w1"].astype(jnp.float32)
    w2f = params["w2"].astype(jnp.float32)
    b1f, b2f = params["b1"], params["b2"]

    def mlp_sh_ref(v):
        x = v.astype(jnp.bfloat16).astype(jnp.float32)
        h = jnp.maximum(x @ w1f + b1f, 0.0)
        h = h.astype(jnp.bfloat16).astype(jnp.float32)
        return (h @ w2f + b2f)[:, :out_dim]

    def ref_forward(sh, spv, spr, level):
        return jnp.stack([mlp_sh_ref(spv), mlp_sh_ref(sh),
                          mlp_sh_ref(level), mlp_sh_ref(spr)], axis=1)

    # --- Tiny case (module-sized): exercises the no-grid fast path ---------
    nodef = node_enc_forward(params, dev_sh, dev_spv, dev_spr, dev_level)
    nodef = jax.block_until_ready(nodef)
    assert nodef.shape == (B, 4, out_dim)
    ref = ref_forward(dev_sh, dev_spv, dev_spr, dev_level)
    assert jnp.allclose(nodef, ref, atol=1e-3, rtol=1e-3), \
        float(jnp.max(jnp.abs(nodef - ref)))

    # --- Larger batch: exercises the tiled, parallel-grid path -------------
    Bb = 600
    kb1, kb2, kb3, kb4 = jax.random.split(kbig, 4)
    big_sh = jax.random.normal(kb1, (Bb, in_dim), jnp.float32)
    big_spv = jax.random.normal(kb2, (Bb, in_dim), jnp.float32)
    big_spr = jax.random.normal(kb3, (Bb, in_dim), jnp.float32)
    big_lvl = jax.random.normal(kb4, (Bb, in_dim), jnp.float32)

    nodef_big = node_enc_forward(params, big_sh, big_spv, big_spr, big_lvl,
                                 tile_b=512)
    nodef_big = jax.block_until_ready(nodef_big)
    assert nodef_big.shape == (Bb, 4, out_dim)
    ref_big = ref_forward(big_sh, big_spv, big_spr, big_lvl)
    assert jnp.allclose(nodef_big, ref_big, atol=1e-3, rtol=1e-3), \
        float(jnp.max(jnp.abs(nodef_big - ref_big)))

    print("KERNEL_OK")
</pallas_src>

<mosaic_0001>
module attributes {stable_mosaic.version = 11 : i64} {
  func.func @_node_enc_kernel(%arg0: memref<8x3xf32, #tpu.memory_space<vmem>>, %arg1: memref<8x3xf32, #tpu.memory_space<vmem>>, %arg2: memref<8x3xf32, #tpu.memory_space<vmem>>, %arg3: memref<8x3xf32, #tpu.memory_space<vmem>>, %arg4: memref<3x128xbf16, #tpu.memory_space<vmem>>, %arg5: memref<1x128xf32, #tpu.memory_space<vmem>>, %arg6: memref<128x128xbf16, #tpu.memory_space<vmem>>, %arg7: memref<1x128xf32, #tpu.memory_space<vmem>>, %arg8: memref<8x512xf32, #tpu.memory_space<vmem>>) attributes {dimension_semantics = [], scalar_prefetch = 0 : i64, scratch_operands = 0 : i64, tpu.core_type = #tpu.core_type<tc>} {
    %c0 = arith.constant 0 : index
    %c0_0 = arith.constant 0 : index
    %0 = vector.load %arg4[%c0, %c0_0] : memref<3x128xbf16, #tpu.memory_space<vmem>>, vector<3x128xbf16>
    %c0_1 = arith.constant 0 : index
    %c0_2 = arith.constant 0 : index
    %1 = vector.load %arg6[%c0_1, %c0_2] : memref<128x128xbf16, #tpu.memory_space<vmem>>, vector<128x128xbf16>
    %c0_3 = arith.constant 0 : index
    %c0_4 = arith.constant 0 : index
    %2 = vector.load %arg5[%c0_3, %c0_4] : memref<1x128xf32, #tpu.memory_space<vmem>>, vector<1x128xf32>
    %c0_5 = arith.constant 0 : index
    %c0_6 = arith.constant 0 : index
    %3 = vector.load %arg7[%c0_5, %c0_6] : memref<1x128xf32, #tpu.memory_space<vmem>>, vector<1x128xf32>
    %c0_7 = arith.constant 0 : index
    %c0_8 = arith.constant 0 : index
    %4 = vector.load %arg0[%c0_7, %c0_8] : memref<8x3xf32, #tpu.memory_space<vmem>>, vector<8x3xf32>
    %5 = arith.truncf %4 : vector<8x3xf32> to vector<8x3xbf16>
    %cst = arith.constant dense<0.000000e+00> : vector<8x128xf32>
    %6 = tpu.matmul %5, %0, %cst {dimension_numbers = #tpu.dot_dimension_numbers<[1], [0], [0], [1], [0, 0, 1, 1], [], []>} : vector<8x3xbf16>, vector<3x128xbf16>, vector<8x128xf32> -> vector<8x128xf32>
    %7 = vector.broadcast %2 : vector<1x128xf32> to vector<8x128xf32>
    %8 = arith.addf %6, %7 : vector<8x128xf32>
    %cst_9 = arith.constant 0.000000e+00 : f32
    %9 = vector.broadcast %cst_9 : f32 to vector<8x128xf32>
    %10 = arith.maximumf %8, %9 : vector<8x128xf32>
    %11 = arith.truncf %10 : vector<8x128xf32> to vector<8x128xbf16>
    %cst_10 = arith.constant dense<0.000000e+00> : vector<8x128xf32>
    %12 = tpu.matmul %11, %1, %cst_10 {dimension_numbers = #tpu.dot_dimension_numbers<[1], [0], [0], [1], [0, 0, 1, 1], [], []>} : vector<8x128xbf16>, vector<128x128xbf16>, vector<8x128xf32> -> vector<8x128xf32>
    %13 = vector.broadcast %3 : vector<1x128xf32> to vector<8x128xf32>
    %14 = arith.addf %12, %13 : vector<8x128xf32>
    %c0_11 = arith.constant 0 : index
    %c0_12 = arith.constant 0 : index
    %15 = vector.load %arg8[%c0_11, %c0_12] : memref<8x512xf32, #tpu.memory_space<vmem>>, vector<8x128xf32>
    tpu.vector_store %arg8[%c0_11, %c0_12], %14 {strides = array<i32>} : memref<8x512xf32, #tpu.memory_space<vmem>>, vector<8x128xf32>,
    %c0_13 = arith.constant 0 : index
    %c0_14 = arith.constant 0 : index
    %16 = vector.load %arg1[%c0_13, %c0_14] : memref<8x3xf32, #tpu.memory_space<vmem>>, vector<8x3xf32>
    %17 = arith.truncf %16 : vector<8x3xf32> to vector<8x3xbf16>
    %cst_15 = arith.constant dense<0.000000e+00> : vector<8x128xf32>
    %18 = tpu.matmul %17, %0, %cst_15 {dimension_numbers = #tpu.dot_dimension_numbers<[1], [0], [0], [1], [0, 0, 1, 1], [], []>} : vector<8x3xbf16>, vector<3x128xbf16>, vector<8x128xf32> -> vector<8x128xf32>
    %19 = vector.broadcast %2 : vector<1x128xf32> to vector<8x128xf32>
    %20 = arith.addf %18, %19 : vector<8x128xf32>
    %cst_16 = arith.constant 0.000000e+00 : f32
    %21 = vector.broadcast %cst_16 : f32 to vector<8x128xf32>
    %22 = arith.maximumf %20, %21 : vector<8x128xf32>
    %23 = arith.truncf %22 : vector<8x128xf32> to vector<8x128xbf16>
    %cst_17 = arith.constant dense<0.000000e+00> : vector<8x128xf32>
    %24 = tpu.matmul %23, %1, %cst_17 {dimension_numbers = #tpu.dot_dimension_numbers<[1], [0], [0], [1], [0, 0, 1, 1], [], []>} : vector<8x128xbf16>, vector<128x128xbf16>, vector<8x128xf32> -> vector<8x128xf32>
    %25 = vector.broadcast %3 : vector<1x128xf32> to vector<8x128xf32>
    %26 = arith.addf %24, %25 : vector<8x128xf32>
    %c0_18 = arith.constant 0 : index
    %c128 = arith.constant 128 : index
    %27 = vector.load %arg8[%c0_18, %c128] : memref<8x512xf32, #tpu.memory_space<vmem>>, vector<8x128xf32>
    tpu.vector_store %arg8[%c0_18, %c128], %26 {strides = array<i32>} : memref<8x512xf32, #tpu.memory_space<vmem>>, vector<8x128xf32>,
    %c0_19 = arith.constant 0 : index
    %c0_20 = arith.constant 0 : index
    %28 = vector.load %arg2[%c0_19, %c0_20] : memref<8x3xf32, #tpu.memory_space<vmem>>, vector<8x3xf32>
    %29 = arith.truncf %28 : vector<8x3xf32> to vector<8x3xbf16>
    %cst_21 = arith.constant dense<0.000000e+00> : vector<8x128xf32>
    %30 = tpu.matmul %29, %0, %cst_21 {dimension_numbers = #tpu.dot_dimension_numbers<[1], [0], [0], [1], [0, 0, 1, 1], [], []>} : vector<8x3xbf16>, vector<3x128xbf16>, vector<8x128xf32> -> vector<8x128xf32>
    %31 = vector.broadcast %2 : vector<1x128xf32> to vector<8x128xf32>
    %32 = arith.addf %30, %31 : vector<8x128xf32>
    %cst_22 = arith.constant 0.000000e+00 : f32
    %33 = vector.broadcast %cst_22 : f32 to vector<8x128xf32>
    %34 = arith.maximumf %32, %33 : vector<8x128xf32>
    %35 = arith.truncf %34 : vector<8x128xf32> to vector<8x128xbf16>
    %cst_23 = arith.constant dense<0.000000e+00> : vector<8x128xf32>
    %36 = tpu.matmul %35, %1, %cst_23 {dimension_numbers = #tpu.dot_dimension_numbers<[1], [0], [0], [1], [0, 0, 1, 1], [], []>} : vector<8x128xbf16>, vector<128x128xbf16>, vector<8x128xf32> -> vector<8x128xf32>
    %37 = vector.broadcast %3 : vector<1x128xf32> to vector<8x128xf32>
    %38 = arith.addf %36, %37 : vector<8x128xf32>
    %c0_24 = arith.constant 0 : index
    %c256 = arith.constant 256 : index
    %39 = vector.load %arg8[%c0_24, %c256] : memref<8x512xf32, #tpu.memory_space<vmem>>, vector<8x128xf32>
    tpu.vector_store %arg8[%c0_24, %c256], %38 {strides = array<i32>} : memref<8x512xf32, #tpu.memory_space<vmem>>, vector<8x128xf32>,
    %c0_25 = arith.constant 0 : index
    %c0_26 = arith.constant 0 : index
    %40 = vector.load %arg3[%c0_25, %c0_26] : memref<8x3xf32, #tpu.memory_space<vmem>>, vector<8x3xf32>
    %41 = arith.truncf %40 : vector<8x3xf32> to vector<8x3xbf16>
    %cst_27 = arith.constant dense<0.000000e+00> : vector<8x128xf32>
    %42 = tpu.matmul %41, %0, %cst_27 {dimension_numbers = #tpu.dot_dimension_numbers<[1], [0], [0], [1], [0, 0, 1, 1], [], []>} : vector<8x3xbf16>, vector<3x128xbf16>, vector<8x128xf32> -> vector<8x128xf32>
    %43 = vector.broadcast %2 : vector<1x128xf32> to vector<8x128xf32>
    %44 = arith.addf %42, %43 : vector<8x128xf32>
    %cst_28 = arith.constant 0.000000e+00 : f32
    %45 = vector.broadcast %cst_28 : f32 to vector<8x128xf32>
    %46 = arith.maximumf %44, %45 : vector<8x128xf32>
    %47 = arith.truncf %46 : vector<8x128xf32> to vector<8x128xbf16>
    %cst_29 = arith.constant dense<0.000000e+00> : vector<8x128xf32>
    %48 = tpu.matmul %47, %1, %cst_29 {dimension_numbers = #tpu.dot_dimension_numbers<[1], [0], [0], [1], [0, 0, 1, 1], [], []>} : vector<8x128xbf16>, vector<128x128xbf16>, vector<8x128xf32> -> vector<8x128xf32>
    %49 = vector.broadcast %3 : vector<1x128xf32> to vector<8x128xf32>
    %50 = arith.addf %48, %49 : vector<8x128xf32>
    %c0_30 = arith.constant 0 : index
    %c384 = arith.constant 384 : index
    %51 = vector.load %arg8[%c0_30, %c384] : memref<8x512xf32, #tpu.memory_space<vmem>>, vector<8x128xf32>
    tpu.vector_store %arg8[%c0_30, %c384], %50 {strides = array<i32>} : memref<8x512xf32, #tpu.memory_space<vmem>>, vector<8x128xf32>,
    return
  }
}

</mosaic_0001>

<bundles_post_ra>
// kernel: tpu_custom_call.1
= control target key start
LH: loop header
LB: loop body
LE: loop exit
PB: predicated region body
PF: predicated region fallthrough
CT: control target
= control target key end

     0   :  { %13 = vsyncpa [#allocation3], 0  ;;  %s465_s0 = inlined_call_operand.vmem [shape: f32[8,3], index: 0, kind: input, shape index: {}]   ;;  %s466_s1 = inlined_call_operand.vmem [shape: f32[8,3], index: 1, kind: input, shape index: {}]   ;;  %s467_s2 = inlined_call_operand.vmem [shape: f32[8,3], index: 2, kind: input, shape index: {}]   ;;  %s468_s3 = inlined_call_operand.vmem [shape: f32[8,3], index: 3, kind: input, shape index: {}]   ;;  %s469_s4 = inlined_call_operand.vmem [shape: bf16[3,128], index: 4, kind: input, shape index: {}]   ;;  %s470_s5 = inlined_call_operand.vmem [shape: f32[1,128], index: 5, kind: input, shape index: {}]   ;;  %s471_s6 = inlined_call_operand.hbm [shape: bf16[128,128], index: 6, kind: input, shape index: {}]   ;;  %s472_s7 = inlined_call_operand.vmem [shape: f32[1,128], index: 7, kind: input, shape index: {}]   ;;  %s473_s8 = inlined_call_operand.hbm [shape: f32[8,512], index: 8, kind: output, shape index: {}]  }
   0x1   :  { %14 = vsyncpa [#allocation4], 0  ;;  %s31_s29 = sshll.u32 %s471_s6, 4  ;;  %s384_s30 = smov [#allocation2]   ;;  %s32_s29 = int_to_ptr.hbm [resolvable:$true] %s31_s29 }
   0x2   :  { %s33_s9 = sshll.u32 %s384_s30, 4  ;;  %s385_s10 = smov 64   ;;  %s34_s9 = int_to_ptr.vmem [resolvable:$true] %s33_s9 }
   0x3   :  { %s386_s11 = smov 4  }
   0x4   :  { %39 = dma.hbm_to_vmem [thread:$0]  %s32_s29, 1024, %s34_s9, [#allocation3], %s385_s10, %s385_s10, %s386_s11  }
   0x5   :  { %380 = dma.done.wait [#allocation3], 1024  }
   0x6   :  { %381 = vsyncadd [#allocation3], 4294966272  ;;  %vm75_vm0 = vcmask 1040384   ;;  %vm76_vm1 = vcmask 1041408   ;;  %v387_v0 = vmov 65535   ;;  %v66_v4 = vld [vmem:[%s465_s0] sm:$0xff] }
   0x7   :  { %v77_v1 = vsel %vm75_vm0, 4294967295, %v387_v0  ;;  %v47_v3 = vld [vmem:[%s469_s4] sm:$0x3]  ;;  %v67_v7 = vpack.c.bf16 %v66_v4, %v66_v4  ;;  %vm71_vm2 = vcmask 23552   ;;  %v324_v9 = vld [vmem:[#allocation2 + $0x38] sm:$0xff]  ;;  %v323_v10 = vld [vmem:[#allocation2 + $0x30] sm:$0xff] }
   0x8   :  { %v78_v2 = vsel %vm76_vm1, %v77_v1, 0  ;;  %v162_v5 = vld [vmem:[%s466_s1] sm:$0xff]  ;;  %148 = vmatpush.bf16.msra.mxu1 %v324_v9  ;;  %182 = vmatpush.bf16.msra.mxu3 %v324_v9  ;;  %v322_v11 = vld [vmem:[#allocation2 + $0x28] sm:$0xff]  ;;  %v320_v15 = vld [vmem:[#allocation2 + $0x18] sm:$0xff]  ;;  %s388_s19 = smov [#allocation5]   ;;  %s271_s23 = sshll.u32 %s473_s8, 4  ;;  %s272_s23 = int_to_ptr.hbm [resolvable:$true] %s271_s23 }
   0x9   :  { %v80_v6 = vand.u32 %v78_v2, %v47_v3  ;;  %v163_v8 = vpack.c.bf16 %v162_v5, %v162_v5  ;;  %v196_v12 = vld [vmem:[%s467_s2] sm:$0xff]  ;;  %v319_v16 = vld [vmem:[#allocation2 + $0x10] sm:$0xff]  ;;  %v318_v19 = vld [vmem:[#allocation2 + $0x8] sm:$0xff]  ;;  %s269_s20 = sshll.u32 %s388_s19, 4  ;;  %s270_s20 = int_to_ptr.vmem [resolvable:$true] %s269_s20 }
   0xa   :  { %v321_v13 = vld [vmem:[#allocation2 + $0x20] sm:$0xff]  ;;  %v197_v14 = vpack.c.bf16 %v196_v12, %v196_v12 }
   0xb   :  { %89 = vmatpush.bf16.msra.mxu0 %v80_v6  ;;  %174 = vmatpush.bf16.msra.mxu2 %v80_v6  ;;  %v230_v17 = vld [vmem:[%s468_s3] sm:$0xff] }
   0xc   :  { %149 = vmatpush.bf16.msra.mxu1 %v323_v10  ;;  %183 = vmatpush.bf16.msra.mxu3 %v323_v10  ;;  %v231_v18 = vpack.c.bf16 %v230_v17, %v230_v17  ;;  %v317_v20 = vld [vmem:[#allocation2] sm:$0xff] }
   0xd   :  { %v330_v21 = vld [vmem:[%s470_s5] ss:$0 sm:$0xff] }
   0xe   :  { %281 = vmatmul.msk.bf16.vlgmr.msra.gmra.mxu0 %vm71_vm2, %v67_v7  ;;  %314 = vmatmul.msk.bf16.vlgmr.msra.gmra.mxu2 %vm71_vm2, %v163_v8  ;;  %v331_v42 = vld [vmem:[%s472_s7] ss:$0 sm:$0xff] }
   0xf   :  { %208 = vmatpush.bf16.msrb.mxu0 %v80_v6  ;;  %216 = vmatpush.bf16.msrb.mxu2 %v324_v9 }
  0x10   :  { %150 = vmatpush.bf16.msra.mxu1 %v322_v11  ;;  %184 = vmatpush.bf16.msra.mxu3 %v322_v11 }
  0x13   :  { %242 = vmatpush.bf16.msra.mxu0 %v80_v6  ;;  %217 = vmatpush.bf16.msrb.mxu2 %v323_v10 }
  0x14   :  { %151 = vmatpush.bf16.msra.mxu1 %v321_v13  ;;  %185 = vmatpush.bf16.msra.mxu3 %v321_v13 }
  0x17   :  { %218 = vmatpush.bf16.msrb.mxu2 %v322_v11 }
  0x18   :  { %152 = vmatpush.bf16.msra.mxu1 %v320_v15  ;;  %186 = vmatpush.bf16.msra.mxu3 %v320_v15 }
  0x1b   :  { %219 = vmatpush.bf16.msrb.mxu2 %v321_v13 }
  0x1c   :  { %153 = vmatpush.bf16.msra.mxu1 %v319_v16  ;;  %187 = vmatpush.bf16.msra.mxu3 %v319_v16 }
  0x1e   :  { %315 = vmatmul.msk.bf16.vlgmr.msrb.gmra.mxu0 %vm71_vm2, %v197_v14 }
  0x1f   :  { %220 = vmatpush.bf16.msrb.mxu2 %v320_v15 }
  0x20   :  { %154 = vmatpush.bf16.msra.mxu1 %v318_v19  ;;  %188 = vmatpush.bf16.msra.mxu3 %v318_v19 }
  0x23   :  { %221 = vmatpush.bf16.msrb.mxu2 %v319_v16 }
  0x24   :  { %155 = vmatpush.bf16.msra.mxu1 %v317_v20  ;;  %189 = vmatpush.bf16.msra.mxu3 %v317_v20 }
  0x27   :  { %222 = vmatpush.bf16.msrb.mxu2 %v318_v19 }
  0x28   :  { %250 = vmatpush.bf16.msrb.mxu1 %v324_v9 }
  0x2b   :  { %223 = vmatpush.bf16.msrb.mxu2 %v317_v20 }
  0x2c   :  { %251 = vmatpush.bf16.msrb.mxu1 %v323_v10 }
  0x2e   :  { %316 = vmatmul.msk.bf16.vlgmr.msra.gmra.mxu0 %vm71_vm2, %v231_v18 }
  0x30   :  { %252 = vmatpush.bf16.msrb.mxu1 %v322_v11 }
  0x34   :  { %253 = vmatpush.bf16.msrb.mxu1 %v321_v13 }
  0x38   :  { %254 = vmatpush.bf16.msrb.mxu1 %v320_v15 }
  0x3c   :  { %255 = vmatpush.bf16.msrb.mxu1 %v319_v16 }
  0x40   :  { %256 = vmatpush.bf16.msrb.mxu1 %v318_v19 }
  0x44   :  { %257 = vmatpush.bf16.msrb.mxu1 %v317_v20 }
  0x8b   :  { %v91_v22 = vpop.f32.mrf.mxu0 }
  0x8c   :  { %v92_v23 = vadd.f32 %v330_v21, %v91_v22 }
  0x8e   :  { %v95_v24 = vmax.f32 %v92_v23, 0.0 }
  0x90   :  { %v96_v25 = vpack.c.bf16 %v95_v24, %v95_v24 }
  0x91   :  { %v176_v26 = vpop.f32.mrf.mxu2 }
  0x92   :  { %156 = vmatmul.bf16.vlgmr.msra.gmra.mxu1 %v96_v25  ;;  %v177_v27 = vadd.f32 %v330_v21, %v176_v26 }
  0x93   :  { %v93_v28 = vpop.f32.mrf.mxu0 }
  0x94   :  { %v180_v29 = vmax.f32 %v177_v27, 0.0 }
  0x96   :  { %v181_v30 = vpack.c.bf16 %v180_v29, %v180_v29 }
  0x98   :  { %190 = vmatmul.bf16.vlgmr.msra.gmra.mxu3 %v181_v30 }
  0x99   :  { %v178_v31 = vpop.f32.mrf.mxu2 }
  0x9b   :  { %v210_v32 = vpop.f32.mrf.mxu0 }
  0x9c   :  { %v211_v33 = vadd.f32 %v330_v21, %v210_v32 }
  0x9e   :  { %v214_v34 = vmax.f32 %v211_v33, 0.0 }
  0xa0   :  { %v215_v35 = vpack.c.bf16 %v214_v34, %v214_v34 }
  0xa2   :  { %224 = vmatmul.bf16.vlgmr.msrb.gmra.mxu2 %v215_v35 }
  0xa3   :  { %v212_v36 = vpop.f32.mrf.mxu0 }
  0xab   :  { %v244_v37 = vpop.f32.mrf.mxu0 }
  0xac   :  { %v245_v38 = vadd.f32 %v330_v21, %v244_v37 }
  0xae   :  { %v248_v39 = vmax.f32 %v245_v38, 0.0 }
  0xb0   :  { %v249_v40 = vpack.c.bf16 %v248_v39, %v248_v39 }
  0xb2   :  { %258 = vmatmul.bf16.vlgmr.msrb.gmra.mxu1 %v249_v40 }
  0xb3   :  { %v246_v41 = vpop.f32.mrf.mxu0 }
 0x10f   :  { %v157_v43 = vpop.f32.mrf.mxu1 }
 0x110   :  { %v158_v44 = vadd.f32 %v331_v42, %v157_v43 }
 0x112   :  { %161 = vst [vmem:[#allocation5] sm:$0xff] %v158_v44 }
 0x117   :  { %v159_v45 = vpop.f32.mrf.mxu1 }
 0x11b   :  { %v191_v46 = vpop.f32.mrf.mxu3 }
 0x11c   :  { %v192_v47 = vadd.f32 %v331_v42, %v191_v46 }
 0x11e   :  { %195 = vst [vmem:[#allocation5 + $0x8] sm:$0xff] %v192_v47 }
 0x123   :  { %v193_v48 = vpop.f32.mrf.mxu3 }
 0x125   :  { %v225_v49 = vpop.f32.mrf.mxu2 }
 0x126   :  { %v226_v50 = vadd.f32 %v331_v42, %v225_v49 }
 0x128   :  { %229 = vst [vmem:[#allocation5 + $0x10] sm:$0xff] %v226_v50 }
 0x12d   :  { %v227_v51 = vpop.f32.mrf.mxu2 }
 0x12f   :  { %v259_v52 = vpop.f32.mrf.mxu1 }
 0x130   :  { %v260_v53 = vadd.f32 %v331_v42, %v259_v52 }
 0x132   :  { %263 = vst [vmem:[#allocation5 + $0x18] sm:$0xff] %v260_v53 }
 0x133   :  { %274 = dma.vmem_to_hbm [thread:$0]  %s270_s20, 512, %s272_s23, [#allocation4]  }
 0x137   :  { %v261_v54 = vpop.f32.mrf.mxu1 }
 0x138   :  { %382 = dma.done.wait [#allocation4], 512  }
 0x139   :  { %383 = vsyncadd [#allocation4], 4294966784 }
 0x13a   :  { %279 = vsyncpa [#allocation3], 1 }
 0x13b   :  { %280 = vsyncpa [#allocation4], 1 }

</bundles_post_ra>
